<compile_context>
chip_gen: v5e
topology: v5e:2x2
jax: 0.10.0
libtpu: 0.0.40
codegen_flags: <defaults>
</compile_context>

<pallas_src>
import functools

import jax
import jax.numpy as jnp
from jax import lax
from jax.experimental import pallas as pl
from jax.experimental.pallas import tpu as pltpu

_BG_ID = 255


def _bg_ce_kernel(x_ref, t_ref, sum_ref, cnt_ref, acc_ref, cacc_ref,
                  *, hw, tm, mask_cols):
    """Per-(batch, spatial-tile) masked accumulation.

    x_ref   : (1, C, TM) logits tile (native dtype)
    t_ref   : (1, 1, TM) int32 targets tile
    sum_ref : (1, 1, 1)  f32 per-batch sum of logits over background positions
    cnt_ref : (1, 1, 1)  f32 per-batch count of background positions
    acc_ref : (1, C, TM) f32 elementwise accumulator (VPU-only in hot loop)
    cacc_ref: (1, 1, TM) f32 elementwise count accumulator
    """
    i = pl.program_id(1)

    @pl.when(i == 0)
    def _():
        acc_ref[...] = jnp.zeros_like(acc_ref)
        cacc_ref[...] = jnp.zeros_like(cacc_ref)

    x = x_ref[...].astype(jnp.float32)            # cast in-VMEM, not on host
    t = t_ref[...]                                # (1, 1, TM) int32
    bg = t == _BG_ID                              # background mask (1, 1, TM)
    if mask_cols:                                 # static: only if HW % TM != 0
        col = i * tm + lax.broadcasted_iota(jnp.int32, t.shape, 2)
        bg = jnp.logical_and(bg, col < hw)        # drop padded columns

    acc_ref[...] += jnp.where(bg, x, 0.0)         # broadcast (1,1,TM)->(1,C,TM)
    cacc_ref[...] += bg.astype(jnp.float32)

    @pl.when(i == pl.num_programs(1) - 1)
    def _():
        sum_ref[...] = jnp.sum(acc_ref[...], keepdims=True)
        cnt_ref[...] = jnp.sum(cacc_ref[...], keepdims=True)


def _pick_tile(hw, c, elem_bytes):
    """Largest lane-aligned TM that keeps VMEM footprint comfortably small.

    Footprint per column: x double-buffered (2*C*elem_bytes) + targets
    double-buffered (2*4) + f32 accumulators (C*4 + 4). Budget of 8 MiB stays
    well under v5e's 16 MiB default scoped VMEM (v6e/v7x have more slack), so
    no vmem_limit_bytes override is needed.
    """
    budget = 8 * 1024 * 1024
    per_col = 2 * c * elem_bytes + 2 * 4 + c * 4 + 4
    tm = max(128, (budget // per_col) // 128 * 128)
    tm = min(tm, 8192)                       # diminishing returns beyond this
    hw_pad = -(-hw // 128) * 128             # round HW up to lane multiple
    return int(min(tm, hw_pad))


def background_ce_loss(outputs, targets):
    """outputs: (N, C, d1..dk) float logits; targets: (N, d1..dk) int labels.

    Returns scalar matching BackgroundCELoss.forward (255 = background id).
    Note: if no target equals 255 the result is inf/nan, same as PyTorch.
    """
    assert outputs.shape[0] == targets.shape[0]
    assert outputs.shape[2:] == targets.shape[1:]

    N, C = int(outputs.shape[0]), int(outputs.shape[1])
    HW = 1
    for d in outputs.shape[2:]:
        HW *= int(d)

    x = outputs.reshape(N, C, HW)                       # free reshape, no copy
    t = targets.astype(jnp.int32).reshape(N, 1, HW)

    TM = _pick_tile(HW, C, jnp.dtype(x.dtype).itemsize)
    nt = pl.cdiv(HW, TM)

    kernel = functools.partial(_bg_ce_kernel, hw=HW, tm=TM,
                               mask_cols=(HW % TM) != 0)

    sums, cnts = pl.pallas_call(
        kernel,
        out_shape=(jax.ShapeDtypeStruct((N, 1, 1), jnp.float32),
                   jax.ShapeDtypeStruct((N, 1, 1), jnp.float32)),
        grid_spec=pltpu.PrefetchScalarGridSpec(
            num_scalar_prefetch=0,
            grid=(N, nt),
            in_specs=[
                pl.BlockSpec((1, C, TM), lambda n, i: (n, 0, i)),
                pl.BlockSpec((1, 1, TM), lambda n, i: (n, 0, i)),
            ],
            out_specs=[
                pl.BlockSpec((1, 1, 1), lambda n, i: (n, 0, 0)),
                pl.BlockSpec((1, 1, 1), lambda n, i: (n, 0, 0)),
            ],
            scratch_shapes=[
                pltpu.VMEM((1, C, TM), jnp.float32),
                pltpu.VMEM((1, 1, TM), jnp.float32),
            ],
        ),
        compiler_params=pltpu.CompilerParams(
            dimension_semantics=("parallel", "arbitrary")),
    )(x, t)

    total = jnp.sum(sums)          # sum over background positions & channels
    denom = jnp.sum(cnts)          # number of background positions
    return (-(total / C)) / denom


def _reference(outputs, targets):
    """Pure-JAX reference of the PyTorch forward."""
    C = outputs.shape[1]
    t = targets.reshape((targets.shape[0], 1) + tuple(targets.shape[1:]))
    mask = (t == _BG_ID).astype(jnp.float32)
    denom = jnp.sum(mask)
    mask = mask / C
    loss = -mask * outputs.astype(jnp.float32)
    return jnp.sum(loss) / denom


if __name__ == "__main__":
    key = jax.random.PRNGKey(0)
    k1, k2, k3 = jax.random.split(key, 3)

    N, C, H, W = 2, 4, 16, 16
    outputs = jax.random.normal(k1, (N, C, H, W), dtype=jnp.float32)
    labels = jax.random.randint(k2, (N, H, W), 0, C, dtype=jnp.int32)
    is_bg = jax.random.bernoulli(k3, 0.3, (N, H, W))
    targets = jnp.where(is_bg, jnp.int32(_BG_ID), labels)   # ~30% background

    loss = background_ce_loss(outputs, targets)
    loss = jax.block_until_ready(loss)

    ref = _reference(outputs, targets)
    assert jnp.allclose(loss, ref, rtol=1e-5, atol=1e-6), (loss, ref)

    print("KERNEL_OK")
</pallas_src>

<mosaic_0001>
module attributes {stable_mosaic.version = 11 : i64} {
  func.func @_bg_ce_kernel(%arg0: i32, %arg1: i32, %arg2: memref<1x4x256xf32, #tpu.memory_space<vmem>>, %arg3: memref<1x1x256xi32, #tpu.memory_space<vmem>>, %arg4: memref<1x1x1xf32, #tpu.memory_space<vmem>>, %arg5: memref<1x1x1xf32, #tpu.memory_space<vmem>>, %arg6: memref<1x4x256xf32, #tpu.memory_space<vmem>>, %arg7: memref<1x1x256xf32, #tpu.memory_space<vmem>>) attributes {dimension_semantics = [#tpu.dimension_semantics<parallel>, #tpu.dimension_semantics<arbitrary>], iteration_bounds = array<i64: 2, 1>, scalar_prefetch = 0 : i64, scratch_operands = 2 : i64, tpu.core_type = #tpu.core_type<tc>, window_params = [{transform_indices = @transform_0, window_bounds = array<i64: 1, 4, 256>}, {transform_indices = @transform_1, window_bounds = array<i64: 1, 1, 256>}, {transform_indices = @transform_2, window_bounds = array<i64: 1, 1, 1>}, {transform_indices = @transform_3, window_bounds = array<i64: 1, 1, 1>}]} {
    %c0_i32 = arith.constant 0 : i32
    %0 = arith.cmpi eq, %arg1, %c0_i32 : i32
    %1 = arith.extui %0 : i1 to i32
    %c0_i32_0 = arith.constant 0 : i32
    %2 = arith.cmpi ne, %1, %c0_i32_0 : i32
    scf.if %2 {
      %cst_20 = arith.constant 0.000000e+00 : f32
      %22 = vector.broadcast %cst_20 : f32 to vector<1x4x256xf32>
      %c0_21 = arith.constant 0 : index
      %c0_22 = arith.constant 0 : index
      %c0_23 = arith.constant 0 : index
      %23 = vector.load %arg6[%c0_21, %c0_22, %c0_23] : memref<1x4x256xf32, #tpu.memory_space<vmem>>, vector<1x4x256xf32>
      tpu.vector_store %arg6[%c0_21, %c0_22, %c0_23], %22 {strides = array<i32>} : memref<1x4x256xf32, #tpu.memory_space<vmem>>, vector<1x4x256xf32>,
      %cst_24 = arith.constant 0.000000e+00 : f32
      %24 = vector.broadcast %cst_24 : f32 to vector<1x1x256xf32>
      %c0_25 = arith.constant 0 : index
      %c0_26 = arith.constant 0 : index
      %c0_27 = arith.constant 0 : index
      %25 = vector.load %arg7[%c0_25, %c0_26, %c0_27] : memref<1x1x256xf32, #tpu.memory_space<vmem>>, vector<1x1x256xf32>
      tpu.vector_store %arg7[%c0_25, %c0_26, %c0_27], %24 {strides = array<i32>} : memref<1x1x256xf32, #tpu.memory_space<vmem>>, vector<1x1x256xf32>,
    } else {
    }
    %c0 = arith.constant 0 : index
    %c0_1 = arith.constant 0 : index
    %c0_2 = arith.constant 0 : index
    %3 = vector.load %arg2[%c0, %c0_1, %c0_2] : memref<1x4x256xf32, #tpu.memory_space<vmem>>, vector<1x4x256xf32>
    %c0_3 = arith.constant 0 : index
    %c0_4 = arith.constant 0 : index
    %c0_5 = arith.constant 0 : index
    %4 = vector.load %arg3[%c0_3, %c0_4, %c0_5] : memref<1x1x256xi32, #tpu.memory_space<vmem>>, vector<1x1x256xi32>
    %c255_i32 = arith.constant 255 : i32
    %5 = vector.broadcast %c255_i32 : i32 to vector<1x1x256xi32>
    %6 = arith.cmpi eq, %4, %5 : vector<1x1x256xi32>
    %c0_6 = arith.constant 0 : index
    %c0_7 = arith.constant 0 : index
    %c0_8 = arith.constant 0 : index
    %7 = vector.load %arg6[%c0_6, %c0_7, %c0_8] : memref<1x4x256xf32, #tpu.memory_space<vmem>>, vector<1x4x256xf32>
    %cst = arith.constant 0.000000e+00 : f32
    %8 = vector.shape_cast %6 : vector<1x1x256xi1> to vector<1x1x256xi1>
    %9 = vector.broadcast %8 : vector<1x1x256xi1> to vector<1x4x256xi1>
    %10 = vector.broadcast %cst : f32 to vector<1x4x256xf32>
    %11 = arith.select %9, %3, %10 : vector<1x4x256xi1>, vector<1x4x256xf32>
    %12 = arith.addf %7, %11 : vector<1x4x256xf32>
    %c0_9 = arith.constant 0 : index
    %c0_10 = arith.constant 0 : index
    %c0_11 = arith.constant 0 : index
    %13 = vector.load %arg6[%c0_9, %c0_10, %c0_11] : memref<1x4x256xf32, #tpu.memory_space<vmem>>, vector<1x4x256xf32>
    tpu.vector_store %arg6[%c0_9, %c0_10, %c0_11], %12 {strides = array<i32>} : memref<1x4x256xf32, #tpu.memory_space<vmem>>, vector<1x4x256xf32>,
    %c0_12 = arith.constant 0 : index
    %c0_13 = arith.constant 0 : index
    %c0_14 = arith.constant 0 : index
    %14 = vector.load %arg7[%c0_12, %c0_13, %c0_14] : memref<1x1x256xf32, #tpu.memory_space<vmem>>, vector<1x1x256xf32>
    %15 = arith.extui %6 : vector<1x1x256xi1> to vector<1x1x256xi32>
    %16 = arith.sitofp %15 : vector<1x1x256xi32> to vector<1x1x256xf32>
    %17 = arith.addf %14, %16 : vector<1x1x256xf32>
    %c0_15 = arith.constant 0 : index
    %c0_16 = arith.constant 0 : index
    %c0_17 = arith.constant 0 : index
    %18 = vector.load %arg7[%c0_15, %c0_16, %c0_17] : memref<1x1x256xf32, #tpu.memory_space<vmem>>, vector<1x1x256xf32>
    tpu.vector_store %arg7[%c0_15, %c0_16, %c0_17], %17 {strides = array<i32>} : memref<1x1x256xf32, #tpu.memory_space<vmem>>, vector<1x1x256xf32>,
    %c0_i32_18 = arith.constant 0 : i32
    %19 = arith.cmpi eq, %arg1, %c0_i32_18 : i32
    %20 = arith.extui %19 : i1 to i32
    %c0_i32_19 = arith.constant 0 : i32
    %21 = arith.cmpi ne, %20, %c0_i32_19 : i32
    scf.if %21 {
      %c0_20 = arith.constant 0 : index
      %c0_21 = arith.constant 0 : index
      %c0_22 = arith.constant 0 : index
      %22 = vector.load %arg6[%c0_20, %c0_21, %c0_22] : memref<1x4x256xf32, #tpu.memory_space<vmem>>, vector<1x4x256xf32>
      %23 = vector.shape_cast %22 : vector<1x4x256xf32> to vector<1x1x4x256xf32>
      %cst_23 = arith.constant dense<0.000000e+00> : vector<1xf32>
      %24 = vector.multi_reduction <add>, %23, %cst_23 [1, 2, 3] : vector<1x1x4x256xf32> to vector<1xf32>
      %25 = vector.shape_cast %24 : vector<1xf32> to vector<1x1x1x1xf32>
      %26 = vector.extract %25[0, 0, 0, 0] : f32 from vector<1x1x1x1xf32>
      %27 = vector.broadcast %26 : f32 to vector<1x1x1xf32>
      %c0_24 = arith.constant 0 : index
      %c0_25 = arith.constant 0 : index
      %c0_26 = arith.constant 0 : index
      %28 = vector.load %arg4[%c0_24, %c0_25, %c0_26] : memref<1x1x1xf32, #tpu.memory_space<vmem>>, vector<1x1x1xf32>
      tpu.vector_store %arg4[%c0_24, %c0_25, %c0_26], %27 {strides = array<i32>} : memref<1x1x1xf32, #tpu.memory_space<vmem>>, vector<1x1x1xf32>,
      %c0_27 = arith.constant 0 : index
      %c0_28 = arith.constant 0 : index
      %c0_29 = arith.constant 0 : index
      %29 = vector.load %arg7[%c0_27, %c0_28, %c0_29] : memref<1x1x256xf32, #tpu.memory_space<vmem>>, vector<1x1x256xf32>
      %30 = vector.shape_cast %29 : vector<1x1x256xf32> to vector<1x1x1x256xf32>
      %cst_30 = arith.constant dense<0.000000e+00> : vector<1xf32>
      %31 = vector.multi_reduction <add>, %30, %cst_30 [1, 2, 3] : vector<1x1x1x256xf32> to vector<1xf32>
      %32 = vector.shape_cast %31 : vector<1xf32> to vector<1x1x1x1xf32>
      %33 = vector.extract %32[0, 0, 0, 0] : f32 from vector<1x1x1x1xf32>
      %34 = vector.broadcast %33 : f32 to vector<1x1x1xf32>
      %c0_31 = arith.constant 0 : index
      %c0_32 = arith.constant 0 : index
      %c0_33 = arith.constant 0 : index
      %35 = vector.load %arg5[%c0_31, %c0_32, %c0_33] : memref<1x1x1xf32, #tpu.memory_space<vmem>>, vector<1x1x1xf32>
      tpu.vector_store %arg5[%c0_31, %c0_32, %c0_33], %34 {strides = array<i32>} : memref<1x1x1xf32, #tpu.memory_space<vmem>>, vector<1x1x1xf32>,
    } else {
    }
    return
  }
  func.func @transform_0(%arg0: i32, %arg1: i32) -> (i32, i32, i32) {
    %c0_i32 = arith.constant 0 : i32
    %c0_i32_0 = arith.constant 0 : i32
    return %arg0, %c0_i32, %arg1 : i32, i32, i32
  }
  func.func @transform_1(%arg0: i32, %arg1: i32) -> (i32, i32, i32) {
    %c0_i32 = arith.constant 0 : i32
    %c0_i32_0 = arith.constant 0 : i32
    return %arg0, %c0_i32, %arg1 : i32, i32, i32
  }
  func.func @transform_2(%arg0: i32, %arg1: i32) -> (i32, i32, i32) {
    %c0_i32 = arith.constant 0 : i32
    %c0_i32_0 = arith.constant 0 : i32
    %c0_i32_1 = arith.constant 0 : i32
    return %arg0, %c0_i32, %c0_i32_0 : i32, i32, i32
  }
  func.func @transform_3(%arg0: i32, %arg1: i32) -> (i32, i32, i32) {
    %c0_i32 = arith.constant 0 : i32
    %c0_i32_0 = arith.constant 0 : i32
    %c0_i32_1 = arith.constant 0 : i32
    return %arg0, %c0_i32, %c0_i32_0 : i32, i32, i32
  }
}

</mosaic_0001>

<bundles_post_ra>
// kernel: tpu_custom_call.1
= control target key start
LH: loop header
LB: loop body
LE: loop exit
PB: predicated region body
PF: predicated region fallthrough
CT: control target
= control target key end

     0   :  { %9 = vsyncpa [#allocation5], 0  ;;  %s801_s0 = inlined_call_operand.hbm [shape: f32[2,4,256], index: 0, kind: input, shape index: {}]   ;;  %s802_s1 = inlined_call_operand.hbm [shape: s32[2,1,256], index: 1, kind: input, shape index: {}]   ;;  %s803_s2 = inlined_call_operand.vmem [shape: f32[2,1,1], index: 2, kind: output, shape index: {0}]   ;;  %s804_s3 = inlined_call_operand.vmem [shape: f32[2,1,1], index: 3, kind: output, shape index: {1}]  }
   0x1   :  { %11 = vsyncpa [#allocation5 + $0x1], 0 }
   0x2   :  { %12 = vsyncpa [#allocation7], 0 }
   0x3   :  { %14 = vsyncpa [#allocation7 + $0x1], 0  ;;  %s686_s12 = smov 0   ;;  %s688_s13 = smov 0  }
   0x4   :  { %s690_s14 = smov 0   ;;  %s692_s15 = smov 0  }
   0x5   :  { %s694_s16 = smov 0   ;;  %s696_s17 = smov 0  }
   0x6 LB: > { %s466_s18 = sadd.s32 4294967295, %s662_s17   ;;  %s32_s19 = sadd.s32 1, %s658_s16  ;;  %s662_s17 = sphi %s696_s17, %s20_s17   ;;  %s658_s16 = sphi %s694_s16, %s814_s16   ;;  %s654_s15 = sphi %s692_s15, %s813_s15   ;;  %s650_s14 = sphi %s690_s14, %s812_s14   ;;  %s646_s13 = sphi %s688_s13, %s811_s13   ;;  %s642_s12 = sphi %s686_s12, %s810_s12  }
   0x7   : > { %p34_p0 = scmp.ge.s32.totalorder %s32_s19, 2  ;;  %s41_s20 = sadd.s32 1, %s650_s14 }
   0x8   : > { %p48_p1 = scmp.ne.s32.totalorder %s650_s14, %s646_s13  ;;  %p49_p2 = scmp.eq.s32.totalorder %s662_s17, 0 }
   0x9   : > { %s816_s19 = smov (%p34_p0, %s32_s19), 0  ;;  %p54_p4 = scmp.ne.s32.totalorder %s646_s13, %s642_s12 }
   0xa   : > { %p722_p3 = por %p49_p2, %p48_p1  ;;  %s36_s22 = ssub.s32 %s658_s16, %s816_s19 }
   0xb   : > { %p55_p5 = scmp.eq.s32.totalorder %s466_s18, 0  ;;  %p39_p6 = scmp.eq.s32.totalorder %s36_s22, 0 }
   0xc   : > { %p497_p8 = scmp.lt.s32.totalorder %s662_s17, 2  ;;  %s158_s25 = sand.u32 1, %s650_s14  }
   0xd   : > { %p729_p7 = por %p55_p5, %p54_p4  ;;  %s481_s26 = sshll.u32 %s658_s16, 3 }
   0xe   : > { %s735_s24 = scalar_select %p39_p6, %s650_s14, %s41_s20  }
   0xf   : > { %s470_s27 = sshll.u32 %s158_s25, 3  ;;  %s169_s30 = scalar_lea.hbm %s801_s0, %s481_s26 }
  0x10   : > { %s171_s4 = sshll.u32 %s169_s30, 4  ;;  %s162_s5 = scalar_lea.vmem [#allocation4], %s470_s27  ;;  %s172_s4 = int_to_ptr.hbm [resolvable:$true] %s171_s4 }
  0x11   : > { %s173_s6 = sshll.u32 %s162_s5, 4  ;;  %p744_p9 = pnand %p497_p8, %p722_p3  ;;  %s174_s6 = int_to_ptr.vmem [resolvable:$true] %s173_s6 }
  0x12   : > { %p475_p10 = scmp.ge.s32.totalorder %s662_s17, 1  ;;  %p199_p11 = scmp.lt.s32.totalorder %s662_s17, 3 }
  0x13   : > { %s473_s8 = sshll.u32 %s158_s25, 1  ;;  %s159_s9 = scalar_lea.sflag [#allocation5], %s158_s25 }
  0x14   : > { %493 = dma.hbm_to_vmem [thread:$0]  (!%p744_p9), %s172_s4, 128, %s174_s6, %s159_s9  }
  0x15   : > { %p200_p12 = pnand %p475_p10, %p199_p11  ;;  %s474_s10 = sshll.u32 %s658_s16, 1 }
  0x16   : > { %s184_s11 = scalar_lea.vmem [#allocation6], %s473_s8  ;;  %s190_s21 = scalar_lea.hbm %s802_s1, %s474_s10 }
  0x17   : > { %s194_s12 = sshll.u32 %s184_s11, 4  ;;  %s192_s22 = sshll.u32 %s190_s21, 4  ;;  %s195_s12 = int_to_ptr.vmem [resolvable:$true] %s194_s12  ;;  %s193_s22 = int_to_ptr.hbm [resolvable:$true] %s192_s22 }
  0x18   : > { %s181_s26 = scalar_lea.sflag [#allocation7], %s158_s25  ;;  %203 = sbr.rel (%p200_p12) target bundleno = 246 (0xf6), region = 28 }
  0x19   : > { %496 = dma.hbm_to_vmem [thread:$0]  (!%p744_p9), %s193_s22, 32, %s195_s12, %s181_s26  }
  0x1a   : > { %s205_s27 = sand.u32 (!%p200_p12), 1, %s646_s13  }
  0x1b   : > { %s476_s28 = sshll.u32 (!%p200_p12), %s205_s27, 3  ;;  %s206_s29 = scalar_lea.sflag (!%p200_p12), [#allocation5], %s205_s27 }
  0x1c   : > { %s209_s30 = scalar_lea.vmem (!%p200_p12), [#allocation4], %s476_s28 }
  0x1d   : > { %633 = dma.done.wait (%p729_p7), %s206_s29, 128  }
  0x1e   : > { %635 = vsyncadd (%p729_p7), %s206_s29, 4294967168  ;;  %s477_s4 = sshll.u32 %s205_s27, 1  ;;  %s216_s5 = scalar_lea.sflag [#allocation7], %s205_s27 }
  0x1f   : > { %s219_s6 = scalar_lea.vmem [#allocation6], %s477_s4 }
  0x20   : > { %637 = dma.done.wait (%p729_p7), %s216_s5, 32  }
  0x21   : > { %639 = vsyncadd (%p729_p7), %s216_s5, 4294967264  ;;  %v262_v0 = vlaneseq  ;;  %v664_v2 = vmov 0.0   ;;  %v267_v3 = vld [vmem:[%s209_s30] sm:$0xff]  ;;  %v268_v4 = vld [vmem:[%s219_s6] sm:$0x3]  ;;  %v665_v5 = vmov 0  }
  0x22   : > { %vm269_vm1 = vcmp.eq.s32.totalorder %v268_v4, 255  ;;  %277 = vst [vmem:[#allocation1] ss:$2 sm:$0xff] %v267_v3  ;;  %vm287_vm4 = vcmask 1043456   ;;  %vm331_vm5 = vcmask 1040384   ;;  %p251_p13 = scmp.lt.s32.totalorder %s654_s15, 1 }
  0x23   : > { %vm767_vm0 = vcmp.lt.s32.totalorder %v262_v0, 256  ;;  %v271_v6 = vsel %vm269_vm1, 1, %v665_v5  ;;  %v478_v7 = vsel %vm269_vm1, 1.0, %v664_v2  ;;  %vm323_vm6 = vcmask 0  }
  0x24   : > { %266 = vst.msk [vmem:[#allocation3] sm:$0x3] %vm767_vm0, %v664_v2  ;;  %v272_v8 = vperm.slane %v271_v6, 0  ;;  %v273_v9 = vperm.slane %v271_v6, 1  ;;  %s818_s15 = smov (!%p251_p13, %s654_s15), 1 }
  0x25   : > { %s253_s7 = scalar_lea.vmem %s803_s2, %s818_s15  ;;  %s256_s11 = scalar_lea.vmem %s804_s3, %s818_s15 }
  0x26   : > { %vm274_vm2 = vcmp.eq.s32.totalorder %v272_v8, 1  ;;  %vm275_vm3 = vcmp.eq.s32.totalorder %v273_v9, 1 }
  0x29   : > { %v278_v12 = vld.sshfl [vmem:[#allocation1] sm:$0xff pattern:$0x75316420]  ;;  %v279_v13 = vld.sshfl [vmem:[#allocation1 + $0x8] sm:$0xff pattern:$0x75316420] }
  0x2a   : > { %v282_v14 = vsel %vm274_vm2, %v278_v12, 0.0  ;;  %v283_v15 = vsel %vm275_vm3, %v279_v13, 0.0 }
  0x2b   : > { %v292_v10 = vld [vmem:[#allocation3] sm:$0x3]  ;;  %v286_v16 = vrot.slane %v283_v15, 4 }
  0x2c   : > { %v294_v11 = vadd.f32 %v478_v7, %v292_v10 }
  0x2d   : > { %v288_v17 = vsel %vm287_vm4, %v282_v14, %v286_v16 }
  0x2e   : > { %299 = vst.msk [vmem:[#allocation3] sm:$0x3] %vm767_vm0, %v294_v11 }
  0x2f   : > { %305 = vst [vmem:[#allocation1] ss:$2 sm:$0xff] %v288_v17 }
  0x35   : > { %v325_v18 = vld [vmem:[#allocation3] sm:$0x3] }
  0x36   : > { %v306_v19 = vld.sshfl [vmem:[#allocation1] sm:$0xff pattern:$0x75316420]  ;;  %v307_v20 = vld.sshfl [vmem:[#allocation1 + $0x8] sm:$0xff pattern:$0x75316420] }
  0x37   : > { %v310_v21 = vsel %vm287_vm4, %v306_v19, 0.0  ;;  %v311_v22 = vsel %vm287_vm4, %v307_v20, 0.0  ;;  %v327_v23 = vperm.slane %v325_v18, 0  ;;  %v328_v24 = vperm.slane %v325_v18, 1 }
  0x38   : > { %v312_v25 = vadd.f32 %v311_v22, %v310_v21 }
  0x39   : > { %v332_v26 = vsel %vm331_vm5, %v327_v23, 0.0  ;;  %v333_v27 = vsel %vm331_vm5, %v328_v24, 0.0 }
  0x3a   : > { %313 = vadd.xlane.f32.xlu0 %v312_v25  ;;  %v334_v28 = vadd.f32 %v333_v27, %v332_v26 }
  0x42   : > { %335 = vadd.xlane.f32.xlu0 %v334_v28 }
  0xad   : > { %v314_v29 = vpop.xlane.xlu0 %313 }
  0xae   : > { %v315_v30 = vrot.slane %v314_v29, 4 }
  0xb0   : > { %v316_v31 = vadd.f32 %v315_v30, %v314_v29 }
  0xb2   : > { %v317_v32 = vrot.slane %v316_v31, 2 }
  0xb4   : > { %v318_v33 = vadd.f32 %v317_v32, %v316_v31 }
  0xb5   : > { %v336_v34 = vpop.xlane.xlu0 %335 }
  0xb6   : > { %v337_v35 = vrot.slane %v336_v34, 4  ;;  %v319_v36 = vrot.slane %v318_v33, 1 }
  0xb8   : > { %v338_v37 = vadd.f32 %v337_v35, %v336_v34  ;;  %v320_v38 = vadd.f32 %v319_v36, %v318_v33 }
  0xba   : > { %v339_v39 = vrot.slane %v338_v37, 2  ;;  %482 = vpush %v320_v38 }
  0xbc   : > { %v340_v40 = vadd.f32 %v339_v39, %v338_v37 }
  0xbe   : > { %v341_v41 = vrot.slane %v340_v40, 1 }
  0xc0   : > { %v342_v42 = vadd.f32 %v341_v41, %v340_v40 }
  0xc2   : > { %484 = vpush %v342_v42 }
  0xeb   : > { %s483_s8 = spop %482 }
  0xec   : > { %v322_v43 = vstv %s483_s8 }
  0xed   : > { %324 = vst.msk [vmem:[%s253_s7] sm:$0x1] %vm323_vm6, %v322_v43 }
  0xf3   : > { %s485_s12 = spop %484 }
  0xf4   : > { %v344_v44 = vstv %s485_s12 }
  0xf5   : > { %345 = vst.msk [vmem:[%s256_s11] sm:$0x1] %vm323_vm6, %v344_v44 }
  0xf6 PF: > { %s20_s17 = sadd.s32 1, %s662_s17   ;;  %s810_s12 = smov %s646_s13 }
  0xf7   : > { %p17_p0 = scmp.ge.s32.totalorder %s20_s17, 4   ;;  %s811_s13 = smov %s650_s14 }
  0xf8   : > { %s812_s14 = smov %s735_s24  ;;  %s813_s15 = smov %s658_s16 }
  0xf9   : > { %s814_s16 = smov %s816_s19  ;;  %19 = sbr.rel (!%p17_p0) target bundleno = 6 (0x6), region = 101 }
  0xfe   :  { %375 = vsyncpa [#allocation5], 1 }
  0xff   :  { %377 = vsyncpa [#allocation5 + $0x1], 1 }
 0x100   :  { %378 = vsyncpa [#allocation7], 1 }
 0x101   :  { %380 = vsyncpa [#allocation7 + $0x1], 1 }

</bundles_post_ra>
